<compile_context>
chip_gen: v5e
topology: v5e:2x2
jax: 0.10.0
libtpu: 0.0.40
codegen_flags: <defaults>
</compile_context>

<pallas_src>
import jax
import jax.numpy as jnp
import numpy as np
from jax import lax
from jax.experimental import pallas as pl
from jax.experimental.pallas import tpu as pltpu

EPS = 1e-5  # nn.GroupNorm default eps


def _build_band(w_hwio, Wdim):
    """(3,3,Cin,Cout) HWIO conv weight -> (3, W*Cin, W*Cout) banded weights.

    band[ky, w_src*Cin + ci, w_out*Cout + co] = w[ky, w_src - w_out + 1, ci, co]
    so that (packed_row_shifted_by_ky) @ band[ky] accumulates the ky-th row of
    the 3x3 convolution directly in the packed (row, W*Cout) layout.
    """
    w = np.asarray(w_hwio, np.float32)
    _, _, ci, co = w.shape
    band = np.zeros((3, Wdim * ci, Wdim * co), np.float32)
    for ky in range(3):
        for w_out in range(Wdim):
            for kx in range(3):
                w_src = w_out + kx - 1
                if 0 <= w_src < Wdim:
                    band[ky,
                         w_src * ci:(w_src + 1) * ci,
                         w_out * co:(w_out + 1) * co] = w[ky, kx]
    return band


def _make_kernel(H, Wdim, Cin, Cout, G):
    WCin = Wdim * Cin
    WCout = Wdim * Cout
    cs = Cout // G
    inv_n = 1.0 / float(H * Wdim * cs)   # GroupNorm reduction size per group

    def shifted(xm):
        # Per-sample block => the zero row IS the spatial zero padding; the
        # row halo never crosses sample boundaries.
        K = xm.shape[-1]
        zero = jnp.zeros((1, K), jnp.float32)
        up = jnp.concatenate([zero, xm[:H - 1]], axis=0)    # row y reads y-1
        down = jnp.concatenate([xm[1:], zero], axis=0)      # row y reads y+1
        return up, down

    def conv3x3(xm, band_ref, bias_ref):
        # 3 lane-dense row-matmuls (one per ky) against banded weights.
        up, down = shifted(xm)
        acc = jnp.dot(up, band_ref[0], preferred_element_type=jnp.float32)
        acc = acc + jnp.dot(xm, band_ref[1], preferred_element_type=jnp.float32)
        acc = acc + jnp.dot(down, band_ref[2], preferred_element_type=jnp.float32)
        return acc + bias_ref[...]

    def group_norm(h, gamma_ref, beta_ref, c2g_ref, g2c_ref):
        # One-pass stats: sum and sum-of-squares in a single sweep, reduced to
        # per-group scalars via packed one-hot matmuls (K = W*Cout), then
        # broadcast back and applied as a single fused affine (h*scale + bias).
        s1 = jnp.sum(h, axis=0, keepdims=True)               # (1, WCout)
        s2 = jnp.sum(h * h, axis=0, keepdims=True)           # (1, WCout)
        s12 = jnp.concatenate([s1, s2], axis=0)              # (2, WCout)
        g12 = jnp.dot(s12, c2g_ref[...],
                      preferred_element_type=jnp.float32) * inv_n   # (2, G)
        mean_g = g12[0:1]
        var_g = g12[1:2] - mean_g * mean_g
        istd_g = lax.rsqrt(var_g + EPS)
        mi = jnp.concatenate([mean_g, istd_g], axis=0)       # (2, G)
        mi_l = jnp.dot(mi, g2c_ref[...],
                       preferred_element_type=jnp.float32)   # (2, WCout)
        scale = mi_l[1:2] * gamma_ref[...]                   # istd * gamma
        bias = beta_ref[...] - mi_l[0:1] * scale             # beta - mean*scale
        return h * scale + bias

    def kernel(x_ref, bandc_ref, bcat_ref, g1_ref, be1_ref,
               band2_ref, b2_ref, g2_ref, be2_ref, g3_ref, be3_ref,
               c2g_ref, g2c_ref, out_ref):
        xm = x_ref[...]                                      # (H, W*Cin)

        # conv1 + shortcut conv share the shifted rows: banded weights are
        # concatenated along the output lane dim, split is vreg-aligned.
        hs = conv3x3(xm, bandc_ref, bcat_ref)                # (H, 2*W*Cout)
        h = hs[:, :WCout]
        sc = hs[:, WCout:]

        # TODO(synk): nn.Dropout(p=0.1) / DropPath omitted (inference
        # semantics: both are identity in eval mode / drop_path=0.0).
        h = jnp.maximum(group_norm(h, g1_ref, be1_ref, c2g_ref, g2c_ref), 0.0)
        h = conv3x3(h, band2_ref, b2_ref)
        h = jnp.maximum(group_norm(h, g2_ref, be2_ref, c2g_ref, g2c_ref), 0.0)

        # norm3(drop_path(h) + shortcut(x)); lane-dense (H, W*Cout) store.
        out_ref[...] = group_norm(h + sc, g3_ref, be3_ref, c2g_ref, g2c_ref)

    return kernel


def residual_block_forward(x_nchw, params, num_groups):
    N, Cin, H, Wdim = x_nchw.shape
    Cout = params["w1"].shape[-1]
    G = num_groups
    WCin = Wdim * Cin
    WCout = Wdim * Cout

    # NCHW -> NHWC -> packed rows (N*H, W*Cin); the reshape is contiguous.
    x = jnp.transpose(x_nchw, (0, 2, 3, 1)).reshape(N * H, WCin)

    # Banded conv weights built once in the wrapper (compile-time constants).
    band_cat = jnp.asarray(np.concatenate(
        [_build_band(params["w1"], Wdim), _build_band(params["ws"], Wdim)],
        axis=-1))                                             # (3, WCin, 2*WCout)
    band2 = jnp.asarray(_build_band(params["w2"], Wdim))      # (3, WCout, WCout)

    def packed(v):  # (1, Cout) per-channel param -> (1, W*Cout) packed lanes
        return jnp.tile(jnp.reshape(v, (-1,)), Wdim).reshape(1, WCout)

    bcat = jnp.concatenate([packed(params["b1"]), packed(params["bs"])],
                           axis=-1)                           # (1, 2*WCout)
    b2p = packed(params["b2"])
    g1p, be1p = packed(params["g1"]), packed(params["be1"])
    g2p, be2p = packed(params["g2"]), packed(params["be2"])
    g3p, be3p = packed(params["g3"]), packed(params["be3"])

    # Packed channel<->group one-hot matrices (lane dim = W*Cout).
    cs = Cout // G
    c2g_np = (np.arange(Cout)[:, None] // cs
              == np.arange(G)[None, :]).astype(np.float32)    # (Cout, G)
    c2g = jnp.asarray(np.tile(c2g_np, (Wdim, 1)))             # (WCout, G)
    g2c = jnp.asarray(np.tile(c2g_np, (Wdim, 1)).T)           # (G, WCout)

    kernel = _make_kernel(H, Wdim, Cin, Cout, G)

    def rep(shape):  # replicated operand: same block every grid step
        return pl.BlockSpec(shape, lambda n: (0,) * len(shape))

    in_specs = [
        pl.BlockSpec((H, WCin), lambda n: (n, 0)),            # per-sample rows
        rep((3, WCin, 2 * WCout)), rep((1, 2 * WCout)),
        rep((1, WCout)), rep((1, WCout)),
        rep((3, WCout, WCout)), rep((1, WCout)),
        rep((1, WCout)), rep((1, WCout)),
        rep((1, WCout)), rep((1, WCout)),
        rep((WCout, G)), rep((G, WCout)),
    ]

    out_flat = pl.pallas_call(
        kernel,
        out_shape=jax.ShapeDtypeStruct((N * H, WCout), jnp.float32),
        grid_spec=pltpu.PrefetchScalarGridSpec(
            num_scalar_prefetch=0,
            grid=(N,),                                        # one sample per step
            in_specs=in_specs,
            out_specs=pl.BlockSpec((H, WCout), lambda n: (n, 0)),
        ),
        compiler_params=pltpu.CompilerParams(
            dimension_semantics=("parallel",)),               # shard over TCs
    )(x, band_cat, bcat, g1p, be1p, band2, b2p, g2p, be2p, g3p, be3p, c2g, g2c)

    out_nhwc = out_flat.reshape(N, H, Wdim, Cout)
    return jnp.transpose(out_nhwc, (0, 3, 1, 2))              # NHWC -> NCHW


def reference_forward(x_nchw, params, num_groups):
    """Pure-JAX reference (same math, XLA ops) for correctness checking."""
    x = jnp.transpose(x_nchw, (0, 2, 3, 1))

    def conv(h, w, b):
        y = lax.conv_general_dilated(
            h, w, window_strides=(1, 1), padding=((1, 1), (1, 1)),
            dimension_numbers=("NHWC", "HWIO", "NHWC"))
        return y + b.reshape(1, 1, 1, -1)

    def gn(h, g, b):
        N, H, W, C = h.shape
        G = num_groups
        hr = h.reshape(N, H * W, G, C // G)
        mean = hr.mean(axis=(1, 3), keepdims=True)
        var = ((hr - mean) ** 2).mean(axis=(1, 3), keepdims=True)
        hn = ((hr - mean) / jnp.sqrt(var + EPS)).reshape(N, H, W, C)
        return hn * g.reshape(1, 1, 1, -1) + b.reshape(1, 1, 1, -1)

    h = jnp.maximum(gn(conv(x, params["w1"], params["b1"]),
                       params["g1"], params["be1"]), 0.0)
    h = jnp.maximum(gn(conv(h, params["w2"], params["b2"]),
                       params["g2"], params["be2"]), 0.0)
    sc = conv(x, params["ws"], params["bs"])
    out = gn(h + sc, params["g3"], params["be3"])
    return jnp.transpose(out, (0, 3, 1, 2))


if __name__ == "__main__":
    N, Cin, H, W = 2, 4, 16, 16
    Cout, G = 8, 4  # in_channels=4 -> out_channels=8, num_groups=4

    key = jax.random.PRNGKey(0)
    keys = jax.random.split(key, 13)

    def nrm(k, shape, scale=0.1):
        return scale * jax.random.normal(k, shape, jnp.float32)

    params = dict(
        w1=nrm(keys[0], (3, 3, Cin, Cout)), b1=nrm(keys[1], (1, Cout)),
        g1=1.0 + nrm(keys[2], (1, Cout)),   be1=nrm(keys[3], (1, Cout)),
        w2=nrm(keys[4], (3, 3, Cout, Cout)), b2=nrm(keys[5], (1, Cout)),
        g2=1.0 + nrm(keys[6], (1, Cout)),   be2=nrm(keys[7], (1, Cout)),
        ws=nrm(keys[8], (3, 3, Cin, Cout)), bs=nrm(keys[9], (1, Cout)),
        g3=1.0 + nrm(keys[10], (1, Cout)),  be3=nrm(keys[11], (1, Cout)),
    )
    x = jax.random.normal(keys[12], (N, Cin, H, W), jnp.float32)

    out = residual_block_forward(x, params, G)
    out = jax.block_until_ready(out)
    assert out.shape == (N, Cout, H, W)

    ref = reference_forward(x, params, G)
    np.testing.assert_allclose(np.asarray(out), np.asarray(ref),
                               atol=5e-4, rtol=5e-4)

    print("KERNEL_OK")
</pallas_src>

<mosaic_0001>
module attributes {stable_mosaic.version = 11 : i64} {
  func.func @kernel(%arg0: i32, %arg1: memref<16x64xf32, #tpu.memory_space<vmem>>, %arg2: memref<3x64x256xf32, #tpu.memory_space<vmem>>, %arg3: memref<1x256xf32, #tpu.memory_space<vmem>>, %arg4: memref<1x128xf32, #tpu.memory_space<vmem>>, %arg5: memref<1x128xf32, #tpu.memory_space<vmem>>, %arg6: memref<3x128x128xf32, #tpu.memory_space<vmem>>, %arg7: memref<1x128xf32, #tpu.memory_space<vmem>>, %arg8: memref<1x128xf32, #tpu.memory_space<vmem>>, %arg9: memref<1x128xf32, #tpu.memory_space<vmem>>, %arg10: memref<1x128xf32, #tpu.memory_space<vmem>>, %arg11: memref<1x128xf32, #tpu.memory_space<vmem>>, %arg12: memref<128x4xf32, #tpu.memory_space<vmem>>, %arg13: memref<4x128xf32, #tpu.memory_space<vmem>>, %arg14: memref<16x128xf32, #tpu.memory_space<vmem>>) attributes {dimension_semantics = [#tpu.dimension_semantics<parallel>], iteration_bounds = array<i64: 2>, scalar_prefetch = 0 : i64, scratch_operands = 0 : i64, tpu.core_type = #tpu.core_type<tc>, window_params = [{transform_indices = @transform_0, window_bounds = array<i64: 16, 64>}, {pipeline_mode = #tpu.pipeline_mode<synchronous>, transform_indices = @transform_1, window_bounds = array<i64: 3, 64, 256>}, {pipeline_mode = #tpu.pipeline_mode<synchronous>, transform_indices = @transform_2, window_bounds = array<i64: 1, 256>}, {pipeline_mode = #tpu.pipeline_mode<synchronous>, transform_indices = @transform_3, window_bounds = array<i64: 1, 128>}, {pipeline_mode = #tpu.pipeline_mode<synchronous>, transform_indices = @transform_4, window_bounds = array<i64: 1, 128>}, {pipeline_mode = #tpu.pipeline_mode<synchronous>, transform_indices = @transform_5, window_bounds = array<i64: 3, 128, 128>}, {pipeline_mode = #tpu.pipeline_mode<synchronous>, transform_indices = @transform_6, window_bounds = array<i64: 1, 128>}, {pipeline_mode = #tpu.pipeline_mode<synchronous>, transform_indices = @transform_7, window_bounds = array<i64: 1, 128>}, {pipeline_mode = #tpu.pipeline_mode<synchronous>, transform_indices = @transform_8, window_bounds = array<i64: 1, 128>}, {pipeline_mode = #tpu.pipeline_mode<synchronous>, transform_indices = @transform_9, window_bounds = array<i64: 1, 128>}, {pipeline_mode = #tpu.pipeline_mode<synchronous>, transform_indices = @transform_10, window_bounds = array<i64: 1, 128>}, {pipeline_mode = #tpu.pipeline_mode<synchronous>, transform_indices = @transform_11, window_bounds = array<i64: 128, 4>}, {pipeline_mode = #tpu.pipeline_mode<synchronous>, transform_indices = @transform_12, window_bounds = array<i64: 4, 128>}, {transform_indices = @transform_13, window_bounds = array<i64: 16, 128>}]} {
    %c0 = arith.constant 0 : index
    %c0_0 = arith.constant 0 : index
    %0 = vector.load %arg1[%c0, %c0_0] : memref<16x64xf32, #tpu.memory_space<vmem>>, vector<16x64xf32>
    %cst = arith.constant 0.000000e+00 : f32
    %1 = vector.broadcast %cst : f32 to vector<1x64xf32>
    %2 = vector.extract_strided_slice %0 {offsets = [0, 0], sizes = [15, 64], strides = [1, 1]} : vector<16x64xf32> to vector<15x64xf32>
    %3 = tpu.concatenate %1, %2 in 0 : vector<1x64xf32>, vector<15x64xf32> -> vector<16x64xf32>
    %4 = vector.extract_strided_slice %0 {offsets = [1, 0], sizes = [15, 64], strides = [1, 1]} : vector<16x64xf32> to vector<15x64xf32>
    %5 = tpu.concatenate %4, %1 in 0 : vector<15x64xf32>, vector<1x64xf32> -> vector<16x64xf32>
    %c0_1 = arith.constant 0 : index
    %c0_2 = arith.constant 0 : index
    %c0_3 = arith.constant 0 : index
    %6 = vector.load %arg2[%c0_1, %c0_2, %c0_3] : memref<3x64x256xf32, #tpu.memory_space<vmem>>, vector<1x64x256xf32>
    %7 = vector.shape_cast %6 : vector<1x64x256xf32> to vector<64x256xf32>
    %cst_4 = arith.constant dense<0.000000e+00> : vector<16x256xf32>
    %8 = tpu.matmul %3, %7, %cst_4 {dimension_numbers = #tpu.dot_dimension_numbers<[1], [0], [0], [1], [0, 0, 1, 1], [], []>} : vector<16x64xf32>, vector<64x256xf32>, vector<16x256xf32> -> vector<16x256xf32>
    %c1 = arith.constant 1 : index
    %c0_5 = arith.constant 0 : index
    %c0_6 = arith.constant 0 : index
    %9 = vector.load %arg2[%c1, %c0_5, %c0_6] : memref<3x64x256xf32, #tpu.memory_space<vmem>>, vector<1x64x256xf32>
    %10 = vector.shape_cast %9 : vector<1x64x256xf32> to vector<64x256xf32>
    %cst_7 = arith.constant dense<0.000000e+00> : vector<16x256xf32>
    %11 = tpu.matmul %0, %10, %cst_7 {dimension_numbers = #tpu.dot_dimension_numbers<[1], [0], [0], [1], [0, 0, 1, 1], [], []>} : vector<16x64xf32>, vector<64x256xf32>, vector<16x256xf32> -> vector<16x256xf32>
    %12 = arith.addf %8, %11 : vector<16x256xf32>
    %c2 = arith.constant 2 : index
    %c0_8 = arith.constant 0 : index
    %c0_9 = arith.constant 0 : index
    %13 = vector.load %arg2[%c2, %c0_8, %c0_9] : memref<3x64x256xf32, #tpu.memory_space<vmem>>, vector<1x64x256xf32>
    %14 = vector.shape_cast %13 : vector<1x64x256xf32> to vector<64x256xf32>
    %cst_10 = arith.constant dense<0.000000e+00> : vector<16x256xf32>
    %15 = tpu.matmul %5, %14, %cst_10 {dimension_numbers = #tpu.dot_dimension_numbers<[1], [0], [0], [1], [0, 0, 1, 1], [], []>} : vector<16x64xf32>, vector<64x256xf32>, vector<16x256xf32> -> vector<16x256xf32>
    %16 = arith.addf %12, %15 : vector<16x256xf32>
    %c0_11 = arith.constant 0 : index
    %c0_12 = arith.constant 0 : index
    %17 = vector.load %arg3[%c0_11, %c0_12] : memref<1x256xf32, #tpu.memory_space<vmem>>, vector<1x256xf32>
    %18 = vector.broadcast %17 : vector<1x256xf32> to vector<16x256xf32>
    %19 = arith.addf %16, %18 : vector<16x256xf32>
    %20 = vector.extract_strided_slice %19 {offsets = [0, 0], sizes = [16, 128], strides = [1, 1]} : vector<16x256xf32> to vector<16x128xf32>
    %21 = vector.extract_strided_slice %19 {offsets = [0, 128], sizes = [16, 128], strides = [1, 1]} : vector<16x256xf32> to vector<16x128xf32>
    %cst_13 = arith.constant dense<0.000000e+00> : vector<128xf32>
    %22 = vector.multi_reduction <add>, %20, %cst_13 [0] : vector<16x128xf32> to vector<128xf32>
    %23 = vector.shape_cast %22 : vector<128xf32> to vector<1x128xf32>
    %24 = arith.mulf %20, %20 : vector<16x128xf32>
    %cst_14 = arith.constant dense<0.000000e+00> : vector<128xf32>
    %25 = vector.multi_reduction <add>, %24, %cst_14 [0] : vector<16x128xf32> to vector<128xf32>
    %26 = vector.shape_cast %25 : vector<128xf32> to vector<1x128xf32>
    %27 = tpu.concatenate %23, %26 in 0 : vector<1x128xf32>, vector<1x128xf32> -> vector<2x128xf32>
    %c0_15 = arith.constant 0 : index
    %c0_16 = arith.constant 0 : index
    %28 = vector.load %arg12[%c0_15, %c0_16] : memref<128x4xf32, #tpu.memory_space<vmem>>, vector<128x4xf32>
    %cst_17 = arith.constant dense<0.000000e+00> : vector<2x4xf32>
    %29 = tpu.matmul %27, %28, %cst_17 {dimension_numbers = #tpu.dot_dimension_numbers<[1], [0], [0], [1], [0, 0, 1, 1], [], []>} : vector<2x128xf32>, vector<128x4xf32>, vector<2x4xf32> -> vector<2x4xf32>
    %cst_18 = arith.constant 0.001953125 : f32
    %30 = vector.broadcast %cst_18 : f32 to vector<2x4xf32>
    %31 = arith.mulf %29, %30 : vector<2x4xf32>
    %32 = vector.extract_strided_slice %31 {offsets = [0, 0], sizes = [1, 4], strides = [1, 1]} : vector<2x4xf32> to vector<1x4xf32>
    %33 = vector.extract_strided_slice %31 {offsets = [1, 0], sizes = [1, 4], strides = [1, 1]} : vector<2x4xf32> to vector<1x4xf32>
    %34 = arith.mulf %32, %32 : vector<1x4xf32>
    %35 = arith.subf %33, %34 : vector<1x4xf32>
    %cst_19 = arith.constant 9.99999974E-6 : f32
    %36 = vector.broadcast %cst_19 : f32 to vector<1x4xf32>
    %37 = arith.addf %35, %36 : vector<1x4xf32>
    %38 = math.rsqrt %37 : vector<1x4xf32>
    %39 = tpu.concatenate %32, %38 in 0 : vector<1x4xf32>, vector<1x4xf32> -> vector<2x4xf32>
    %c0_20 = arith.constant 0 : index
    %c0_21 = arith.constant 0 : index
    %40 = vector.load %arg13[%c0_20, %c0_21] : memref<4x128xf32, #tpu.memory_space<vmem>>, vector<4x128xf32>
    %cst_22 = arith.constant dense<0.000000e+00> : vector<2x128xf32>
    %41 = tpu.matmul %39, %40, %cst_22 {dimension_numbers = #tpu.dot_dimension_numbers<[1], [0], [0], [1], [0, 0, 1, 1], [], []>} : vector<2x4xf32>, vector<4x128xf32>, vector<2x128xf32> -> vector<2x128xf32>
    %42 = vector.extract_strided_slice %41 {offsets = [1, 0], sizes = [1, 128], strides = [1, 1]} : vector<2x128xf32> to vector<1x128xf32>
    %c0_23 = arith.constant 0 : index
    %c0_24 = arith.constant 0 : index
    %43 = vector.load %arg4[%c0_23, %c0_24] : memref<1x128xf32, #tpu.memory_space<vmem>>, vector<1x128xf32>
    %44 = arith.mulf %42, %43 : vector<1x128xf32>
    %c0_25 = arith.constant 0 : index
    %c0_26 = arith.constant 0 : index
    %45 = vector.load %arg5[%c0_25, %c0_26] : memref<1x128xf32, #tpu.memory_space<vmem>>, vector<1x128xf32>
    %46 = vector.extract_strided_slice %41 {offsets = [0, 0], sizes = [1, 128], strides = [1, 1]} : vector<2x128xf32> to vector<1x128xf32>
    %47 = arith.mulf %46, %44 : vector<1x128xf32>
    %48 = arith.subf %45, %47 : vector<1x128xf32>
    %49 = vector.broadcast %44 : vector<1x128xf32> to vector<16x128xf32>
    %50 = arith.mulf %20, %49 : vector<16x128xf32>
    %51 = vector.broadcast %48 : vector<1x128xf32> to vector<16x128xf32>
    %52 = arith.addf %50, %51 : vector<16x128xf32>
    %cst_27 = arith.constant 0.000000e+00 : f32
    %53 = vector.broadcast %cst_27 : f32 to vector<16x128xf32>
    %54 = arith.maximumf %52, %53 : vector<16x128xf32>
    %cst_28 = arith.constant 0.000000e+00 : f32
    %55 = vector.broadcast %cst_28 : f32 to vector<1x128xf32>
    %56 = vector.extract_strided_slice %54 {offsets = [0, 0], sizes = [15, 128], strides = [1, 1]} : vector<16x128xf32> to vector<15x128xf32>
    %57 = tpu.concatenate %55, %56 in 0 : vector<1x128xf32>, vector<15x128xf32> -> vector<16x128xf32>
    %58 = vector.extract_strided_slice %54 {offsets = [1, 0], sizes = [15, 128], strides = [1, 1]} : vector<16x128xf32> to vector<15x128xf32>
    %59 = tpu.concatenate %58, %55 in 0 : vector<15x128xf32>, vector<1x128xf32> -> vector<16x128xf32>
    %c0_29 = arith.constant 0 : index
    %c0_30 = arith.constant 0 : index
    %c0_31 = arith.constant 0 : index
    %60 = vector.load %arg6[%c0_29, %c0_30, %c0_31] : memref<3x128x128xf32, #tpu.memory_space<vmem>>, vector<1x128x128xf32>
    %61 = vector.shape_cast %60 : vector<1x128x128xf32> to vector<128x128xf32>
    %cst_32 = arith.constant dense<0.000000e+00> : vector<16x128xf32>
    %62 = tpu.matmul %57, %61, %cst_32 {dimension_numbers = #tpu.dot_dimension_numbers<[1], [0], [0], [1], [0, 0, 1, 1], [], []>} : vector<16x128xf32>, vector<128x128xf32>, vector<16x128xf32> -> vector<16x128xf32>
    %c1_33 = arith.constant 1 : index
    %c0_34 = arith.constant 0 : index
    %c0_35 = arith.constant 0 : index
    %63 = vector.load %arg6[%c1_33, %c0_34, %c0_35] : memref<3x128x128xf32, #tpu.memory_space<vmem>>, vector<1x128x128xf32>
    %64 = vector.shape_cast %63 : vector<1x128x128xf32> to vector<128x128xf32>
    %cst_36 = arith.constant dense<0.000000e+00> : vector<16x128xf32>
    %65 = tpu.matmul %54, %64, %cst_36 {dimension_numbers = #tpu.dot_dimension_numbers<[1], [0], [0], [1], [0, 0, 1, 1], [], []>} : vector<16x128xf32>, vector<128x128xf32>, vector<16x128xf32> -> vector<16x128xf32>
    %66 = arith.addf %62, %65 : vector<16x128xf32>
    %c2_37 = arith.constant 2 : index
    %c0_38 = arith.constant 0 : index
    %c0_39 = arith.constant 0 : index
    %67 = vector.load %arg6[%c2_37, %c0_38, %c0_39] : memref<3x128x128xf32, #tpu.memory_space<vmem>>, vector<1x128x128xf32>
    %68 = vector.shape_cast %67 : vector<1x128x128xf32> to vector<128x128xf32>
    %cst_40 = arith.constant dense<0.000000e+00> : vector<16x128xf32>
    %69 = tpu.matmul %59, %68, %cst_40 {dimension_numbers = #tpu.dot_dimension_numbers<[1], [0], [0], [1], [0, 0, 1, 1], [], []>} : vector<16x128xf32>, vector<128x128xf32>, vector<16x128xf32> -> vector<16x128xf32>
    %70 = arith.addf %66, %69 : vector<16x128xf32>
    %c0_41 = arith.constant 0 : index
    %c0_42 = arith.constant 0 : index
    %71 = vector.load %arg7[%c0_41, %c0_42] : memref<1x128xf32, #tpu.memory_space<vmem>>, vector<1x128xf32>
    %72 = vector.broadcast %71 : vector<1x128xf32> to vector<16x128xf32>
    %73 = arith.addf %70, %72 : vector<16x128xf32>
    %cst_43 = arith.constant dense<0.000000e+00> : vector<128xf32>
    %74 = vector.multi_reduction <add>, %73, %cst_43 [0] : vector<16x128xf32> to vector<128xf32>
    %75 = vector.shape_cast %74 : vector<128xf32> to vector<1x128xf32>
    %76 = arith.mulf %73, %73 : vector<16x128xf32>
    %cst_44 = arith.constant dense<0.000000e+00> : vector<128xf32>
    %77 = vector.multi_reduction <add>, %76, %cst_44 [0] : vector<16x128xf32> to vector<128xf32>
    %78 = vector.shape_cast %77 : vector<128xf32> to vector<1x128xf32>
    %79 = tpu.concatenate %75, %78 in 0 : vector<1x128xf32>, vector<1x128xf32> -> vector<2x128xf32>
    %c0_45 = arith.constant 0 : index
    %c0_46 = arith.constant 0 : index
    %80 = vector.load %arg12[%c0_45, %c0_46] : memref<128x4xf32, #tpu.memory_space<vmem>>, vector<128x4xf32>
    %cst_47 = arith.constant dense<0.000000e+00> : vector<2x4xf32>
    %81 = tpu.matmul %79, %80, %cst_47 {dimension_numbers = #tpu.dot_dimension_numbers<[1], [0], [0], [1], [0, 0, 1, 1], [], []>} : vector<2x128xf32>, vector<128x4xf32>, vector<2x4xf32> -> vector<2x4xf32>
    %cst_48 = arith.constant 0.001953125 : f32
    %82 = vector.broadcast %cst_48 : f32 to vector<2x4xf32>
    %83 = arith.mulf %81, %82 : vector<2x4xf32>
    %84 = vector.extract_strided_slice %83 {offsets = [0, 0], sizes = [1, 4], strides = [1, 1]} : vector<2x4xf32> to vector<1x4xf32>
    %85 = vector.extract_strided_slice %83 {offsets = [1, 0], sizes = [1, 4], strides = [1, 1]} : vector<2x4xf32> to vector<1x4xf32>
    %86 = arith.mulf %84, %84 : vector<1x4xf32>
    %87 = arith.subf %85, %86 : vector<1x4xf32>
    %cst_49 = arith.constant 9.99999974E-6 : f32
    %88 = vector.broadcast %cst_49 : f32 to vector<1x4xf32>
    %89 = arith.addf %87, %88 : vector<1x4xf32>
    %90 = math.rsqrt %89 : vector<1x4xf32>
    %91 = tpu.concatenate %84, %90 in 0 : vector<1x4xf32>, vector<1x4xf32> -> vector<2x4xf32>
    %c0_50 = arith.constant 0 : index
    %c0_51 = arith.constant 0 : index
    %92 = vector.load %arg13[%c0_50, %c0_51] : memref<4x128xf32, #tpu.memory_space<vmem>>, vector<4x128xf32>
    %cst_52 = arith.constant dense<0.000000e+00> : vector<2x128xf32>
    %93 = tpu.matmul %91, %92, %cst_52 {dimension_numbers = #tpu.dot_dimension_numbers<[1], [0], [0], [1], [0, 0, 1, 1], [], []>} : vector<2x4xf32>, vector<4x128xf32>, vector<2x128xf32> -> vector<2x128xf32>
    %94 = vector.extract_strided_slice %93 {offsets = [1, 0], sizes = [1, 128], strides = [1, 1]} : vector<2x128xf32> to vector<1x128xf32>
    %c0_53 = arith.constant 0 : index
    %c0_54 = arith.constant 0 : index
    %95 = vector.load %arg8[%c0_53, %c0_54] : memref<1x128xf32, #tpu.memory_space<vmem>>, vector<1x128xf32>
    %96 = arith.mulf %94, %95 : vector<1x128xf32>
    %c0_55 = arith.constant 0 : index
    %c0_56 = arith.constant 0 : index
    %97 = vector.load %arg9[%c0_55, %c0_56] : memref<1x128xf32, #tpu.memory_space<vmem>>, vector<1x128xf32>
    %98 = vector.extract_strided_slice %93 {offsets = [0, 0], sizes = [1, 128], strides = [1, 1]} : vector<2x128xf32> to vector<1x128xf32>
    %99 = arith.mulf %98, %96 : vector<1x128xf32>
    %100 = arith.subf %97, %99 : vector<1x128xf32>
    %101 = vector.broadcast %96 : vector<1x128xf32> to vector<16x128xf32>
    %102 = arith.mulf %73, %101 : vector<16x128xf32>
    %103 = vector.broadcast %100 : vector<1x128xf32> to vector<16x128xf32>
    %104 = arith.addf %102, %103 : vector<16x128xf32>
    %cst_57 = arith.constant 0.000000e+00 : f32
    %105 = vector.broadcast %cst_57 : f32 to vector<16x128xf32>
    %106 = arith.maximumf %104, %105 : vector<16x128xf32>
    %107 = arith.addf %106, %21 : vector<16x128xf32>
    %cst_58 = arith.constant dense<0.000000e+00> : vector<128xf32>
    %108 = vector.multi_reduction <add>, %107, %cst_58 [0] : vector<16x128xf32> to vector<128xf32>
    %109 = vector.shape_cast %108 : vector<128xf32> to vector<1x128xf32>
    %110 = arith.mulf %107, %107 : vector<16x128xf32>
    %cst_59 = arith.constant dense<0.000000e+00> : vector<128xf32>
    %111 = vector.multi_reduction <add>, %110, %cst_59 [0] : vector<16x128xf32> to vector<128xf32>
    %112 = vector.shape_cast %111 : vector<128xf32> to vector<1x128xf32>
    %113 = tpu.concatenate %109, %112 in 0 : vector<1x128xf32>, vector<1x128xf32> -> vector<2x128xf32>
    %c0_60 = arith.constant 0 : index
    %c0_61 = arith.constant 0 : index
    %114 = vector.load %arg12[%c0_60, %c0_61] : memref<128x4xf32, #tpu.memory_space<vmem>>, vector<128x4xf32>
    %cst_62 = arith.constant dense<0.000000e+00> : vector<2x4xf32>
    %115 = tpu.matmul %113, %114, %cst_62 {dimension_numbers = #tpu.dot_dimension_numbers<[1], [0], [0], [1], [0, 0, 1, 1], [], []>} : vector<2x128xf32>, vector<128x4xf32>, vector<2x4xf32> -> vector<2x4xf32>
    %cst_63 = arith.constant 0.001953125 : f32
    %116 = vector.broadcast %cst_63 : f32 to vector<2x4xf32>
    %117 = arith.mulf %115, %116 : vector<2x4xf32>
    %118 = vector.extract_strided_slice %117 {offsets = [0, 0], sizes = [1, 4], strides = [1, 1]} : vector<2x4xf32> to vector<1x4xf32>
    %119 = vector.extract_strided_slice %117 {offsets = [1, 0], sizes = [1, 4], strides = [1, 1]} : vector<2x4xf32> to vector<1x4xf32>
    %120 = arith.mulf %118, %118 : vector<1x4xf32>
    %121 = arith.subf %119, %120 : vector<1x4xf32>
    %cst_64 = arith.constant 9.99999974E-6 : f32
    %122 = vector.broadcast %cst_64 : f32 to vector<1x4xf32>
    %123 = arith.addf %121, %122 : vector<1x4xf32>
    %124 = math.rsqrt %123 : vector<1x4xf32>
    %125 = tpu.concatenate %118, %124 in 0 : vector<1x4xf32>, vector<1x4xf32> -> vector<2x4xf32>
    %c0_65 = arith.constant 0 : index
    %c0_66 = arith.constant 0 : index
    %126 = vector.load %arg13[%c0_65, %c0_66] : memref<4x128xf32, #tpu.memory_space<vmem>>, vector<4x128xf32>
    %cst_67 = arith.constant dense<0.000000e+00> : vector<2x128xf32>
    %127 = tpu.matmul %125, %126, %cst_67 {dimension_numbers = #tpu.dot_dimension_numbers<[1], [0], [0], [1], [0, 0, 1, 1], [], []>} : vector<2x4xf32>, vector<4x128xf32>, vector<2x128xf32> -> vector<2x128xf32>
    %128 = vector.extract_strided_slice %127 {offsets = [1, 0], sizes = [1, 128], strides = [1, 1]} : vector<2x128xf32> to vector<1x128xf32>
    %c0_68 = arith.constant 0 : index
    %c0_69 = arith.constant 0 : index
    %129 = vector.load %arg10[%c0_68, %c0_69] : memref<1x128xf32, #tpu.memory_space<vmem>>, vector<1x128xf32>
    %130 = arith.mulf %128, %129 : vector<1x128xf32>
    %c0_70 = arith.constant 0 : index
    %c0_71 = arith.constant 0 : index
    %131 = vector.load %arg11[%c0_70, %c0_71] : memref<1x128xf32, #tpu.memory_space<vmem>>, vector<1x128xf32>
    %132 = vector.extract_strided_slice %127 {offsets = [0, 0], sizes = [1, 128], strides = [1, 1]} : vector<2x128xf32> to vector<1x128xf32>
    %133 = arith.mulf %132, %130 : vector<1x128xf32>
    %134 = arith.subf %131, %133 : vector<1x128xf32>
    %135 = vector.broadcast %130 : vector<1x128xf32> to vector<16x128xf32>
    %136 = arith.mulf %107, %135 : vector<16x128xf32>
    %137 = vector.broadcast %134 : vector<1x128xf32> to vector<16x128xf32>
    %138 = arith.addf %136, %137 : vector<16x128xf32>
    %c0_72 = arith.constant 0 : index
    %c0_73 = arith.constant 0 : index
    %139 = vector.load %arg14[%c0_72, %c0_73] : memref<16x128xf32, #tpu.memory_space<vmem>>, vector<16x128xf32>
    tpu.vector_store %arg14[%c0_72, %c0_73], %138 {strides = array<i32>} : memref<16x128xf32, #tpu.memory_space<vmem>>, vector<16x128xf32>,
    return
  }
  func.func @transform_0(%arg0: i32) -> (i32, i32) {
    %c0_i32 = arith.constant 0 : i32
    %c0_i32_0 = arith.constant 0 : i32
    return %arg0, %c0_i32 : i32, i32
  }
  func.func @transform_1(%arg0: i32) -> (i32, i32, i32) {
    %c0_i32 = arith.constant 0 : i32
    %c0_i32_0 = arith.constant 0 : i32
    %c0_i32_1 = arith.constant 0 : i32
    %c0_i32_2 = arith.constant 0 : i32
    return %c0_i32, %c0_i32_0, %c0_i32_1 : i32, i32, i32
  }
  func.func @transform_2(%arg0: i32) -> (i32, i32) {
    %c0_i32 = arith.constant 0 : i32
    %c0_i32_0 = arith.constant 0 : i32
    %c0_i32_1 = arith.constant 0 : i32
    return %c0_i32, %c0_i32_0 : i32, i32
  }
  func.func @transform_3(%arg0: i32) -> (i32, i32) {
    %c0_i32 = arith.constant 0 : i32
    %c0_i32_0 = arith.constant 0 : i32
    %c0_i32_1 = arith.constant 0 : i32
    return %c0_i32, %c0_i32_0 : i32, i32
  }
  func.func @transform_4(%arg0: i32) -> (i32, i32) {
    %c0_i32 = arith.constant 0 : i32
    %c0_i32_0 = arith.constant 0 : i32
    %c0_i32_1 = arith.constant 0 : i32
    return %c0_i32, %c0_i32_0 : i32, i32
  }
  func.func @transform_5(%arg0: i32) -> (i32, i32, i32) {
    %c0_i32 = arith.constant 0 : i32
    %c0_i32_0 = arith.constant 0 : i32
    %c0_i32_1 = arith.constant 0 : i32
    %c0_i32_2 = arith.constant 0 : i32
    return %c0_i32, %c0_i32_0, %c0_i32_1 : i32, i32, i32
  }
  func.func @transform_6(%arg0: i32) -> (i32, i32) {
    %c0_i32 = arith.constant 0 : i32
    %c0_i32_0 = arith.constant 0 : i32
    %c0_i32_1 = arith.constant 0 : i32
    return %c0_i32, %c0_i32_0 : i32, i32
  }
  func.func @transform_7(%arg0: i32) -> (i32, i32) {
    %c0_i32 = arith.constant 0 : i32
    %c0_i32_0 = arith.constant 0 : i32
    %c0_i32_1 = arith.constant 0 : i32
    return %c0_i32, %c0_i32_0 : i32, i32
  }
  func.func @transform_8(%arg0: i32) -> (i32, i32) {
    %c0_i32 = arith.constant 0 : i32
    %c0_i32_0 = arith.constant 0 : i32
    %c0_i32_1 = arith.constant 0 : i32
    return %c0_i32, %c0_i32_0 : i32, i32
  }
  func.func @transform_9(%arg0: i32) -> (i32, i32) {
    %c0_i32 = arith.constant 0 : i32
    %c0_i32_0 = arith.constant 0 : i32
    %c0_i32_1 = arith.constant 0 : i32
    return %c0_i32, %c0_i32_0 : i32, i32
  }
  func.func @transform_10(%arg0: i32) -> (i32, i32) {
    %c0_i32 = arith.constant 0 : i32
    %c0_i32_0 = arith.constant 0 : i32
    %c0_i32_1 = arith.constant 0 : i32
    return %c0_i32, %c0_i32_0 : i32, i32
  }
  func.func @transform_11(%arg0: i32) -> (i32, i32) {
    %c0_i32 = arith.constant 0 : i32
    %c0_i32_0 = arith.constant 0 : i32
    %c0_i32_1 = arith.constant 0 : i32
    return %c0_i32, %c0_i32_0 : i32, i32
  }
  func.func @transform_12(%arg0: i32) -> (i32, i32) {
    %c0_i32 = arith.constant 0 : i32
    %c0_i32_0 = arith.constant 0 : i32
    %c0_i32_1 = arith.constant 0 : i32
    return %c0_i32, %c0_i32_0 : i32, i32
  }
  func.func @transform_13(%arg0: i32) -> (i32, i32) {
    %c0_i32 = arith.constant 0 : i32
    %c0_i32_0 = arith.constant 0 : i32
    return %arg0, %c0_i32 : i32, i32
  }
}

</mosaic_0001>

<bundles_post_ra>
// kernel: tpu_custom_call.1
= control target key start
LH: loop header
LB: loop body
LE: loop exit
PB: predicated region body
PF: predicated region fallthrough
CT: control target
= control target key end

     0   :  { %s1946_s0 = inlined_call_operand.vmem [shape: f32[32,64], index: 0, kind: input, shape index: {}]   ;;  %s1947_s1 = inlined_call_operand.hbm [shape: f32[3,64,256], index: 1, kind: input, shape index: {}]   ;;  %s1948_s2 = inlined_call_operand.vmem [shape: f32[1,256], index: 2, kind: input, shape index: {}]   ;;  %s1949_s3 = inlined_call_operand.vmem [shape: f32[1,128], index: 3, kind: input, shape index: {}]   ;;  %s1950_s4 = inlined_call_operand.vmem [shape: f32[1,128], index: 4, kind: input, shape index: {}]   ;;  %s1951_s5 = inlined_call_operand.hbm [shape: f32[3,128,128], index: 5, kind: input, shape index: {}]   ;;  %s1952_s6 = inlined_call_operand.vmem [shape: f32[1,128], index: 6, kind: input, shape index: {}]   ;;  %s1953_s7 = inlined_call_operand.vmem [shape: f32[1,128], index: 7, kind: input, shape index: {}]   ;;  %s1954_s8 = inlined_call_operand.vmem [shape: f32[1,128], index: 8, kind: input, shape index: {}]   ;;  %s1955_s9 = inlined_call_operand.vmem [shape: f32[1,128], index: 9, kind: input, shape index: {}]   ;;  %s1956_s10 = inlined_call_operand.vmem [shape: f32[1,128], index: 10, kind: input, shape index: {}]   ;;  %s1957_s11 = inlined_call_operand.vmem [shape: f32[128,4], index: 11, kind: input, shape index: {}]   ;;  %s1958_s12 = inlined_call_operand.vmem [shape: f32[4,128], index: 12, kind: input, shape index: {}]   ;;  %s1959_s13 = inlined_call_operand.hbm [shape: f32[32,128], index: 13, kind: output, shape index: {}]  }
   0x1   :  { %1964 = sst [smem:[#allocation15_spill]] %s1947_s1 }
   0x2   :  { %18 = vsyncpa [#allocation3], 0 }
   0x3   :  { %19 = vsyncpa [#allocation6], 0 }
   0x4   :  { %20 = vsyncpa [#allocation4], 0 }
   0x5   :  { %22 = vsyncpa [#allocation4 + $0x1], 0  ;;  %s1595_s25 = smov 0   ;;  %s1597_s26 = smov 0  }
   0x6   :  { %s1599_s27 = smov 0   ;;  %s1601_s28 = smov 0  }
   0x7 LB: > { %1965 = sst [smem:[#allocation11_spill]] %s1511_s27  ;;  %s1616_s29 = sadd.s32 4294967295, %s1515_s28   ;;  %s1515_s28 = sphi %s1601_s28, %s1974_s28   ;;  %s1511_s27 = sphi %s1599_s27, %s1976_s27   ;;  %s1507_s26 = sphi %s1597_s26, %s1978_s26   ;;  %s1503_s25 = sphi %s1595_s25, %s1977_s25  }
   0x8   : > { %s1271_s30 = sadd.s32 4294967294, %s1515_s28   ;;  %s1620_s14 = sadd.s32 1, %s1515_s28  }
   0x9   : > { %1966 = sst [smem:[#allocation12_spill]] %s1620_s14  ;;  %s313_s15 = sadd.s32 1, %s1511_s27 }
   0xa   : > { %s310_s16 = ssub.s32 %s1515_s28, %s1620_s14  ;;  %p323_p0 = scmp.ne.s32.totalorder %s1511_s27, %s1507_s26 }
   0xb   : > { %p311_p1 = scmp.eq.s32.totalorder %s310_s16, 0  ;;  %p324_p2 = scmp.eq.s32.totalorder %s1616_s29, 1 }
   0xc   : > { %p329_p3 = scmp.ne.s32.totalorder %s1507_s26, %s1503_s25  ;;  %p330_p4 = scmp.eq.s32.totalorder %s1271_s30, 1 }
   0xd   : > { %s1631_s17 = scalar_select %p311_p1, %s1511_s27, %s313_s15  }
   0xe   : > { %p1633_p5 = por %p324_p2, %p323_p0  ;;  %p1637_p6 = por %p330_p4, %p329_p3 }
   0xf   : > { %1967 = sst [smem:[#allocation13_spill]] %s1631_s17  ;;  %p1272_p7 = scmp.ge.s32.totalorder %s1515_s28, 1 }
  0x10   : > { %s1969_s19 = scalar_select %p1637_p6, 1, 0 }
  0x11   : > { %p337_p8 = scmp.lt.s32.totalorder %s1515_s28, 3  ;;  %p1330_p9 = scmp.eq.s32.totalorder %s1616_s29, 0 }
  0x12   : > { %1970 = sst [smem:[#allocation14_spill]] %s1969_s19  ;;  %s1517_s24 = smov [#allocation2]  }
  0x13   : > { %p1644_p10 = pnand %p1272_p7, %p337_p8  ;;  %s1972_s1 = sld [smem:[#allocation15_spill]] }
  0x14   : > { %s350_s30 = sshll.u32 %s1517_s24, 4  ;;  %s371_s17 = sshll.u32 %s1951_s5, 4  ;;  %s351_s30 = int_to_ptr.vmem [resolvable:$true] %s350_s30  ;;  %s372_s17 = int_to_ptr.hbm [resolvable:$true] %s371_s17 }
  0x15   : > { %p1319_p11 = pneg %p1644_p10  ;;  %s1518_s27 = smov 256  }
  0x16   : > { %s1519_s14 = smov 16   ;;  %s1520_s19 = smov [#allocation5]  }
  0x17   : > { %p1320_p12 = pnand %p1330_p9, %p1319_p11  ;;  %s373_s21 = sshll.u32 %s1520_s19, 4  ;;  %s374_s21 = int_to_ptr.vmem [resolvable:$true] %s373_s21 }
  0x18   : > { %s1521_s22 = smov 128   ;;  %419 = sbr.rel (%p1644_p10) target bundleno = 1314 (0x522), region = 72 }
  0x19   : > { %s348_s23 = sshll.u32 %s1972_s1, 4  ;;  %s1522_s1 = smov 8   ;;  %s349_s23 = int_to_ptr.hbm [resolvable:$true] %s348_s23 }
  0x1a   : > { %1322 = dma.hbm_to_vmem [thread:$0]  (!%p1320_p12), %s349_s23, 6144, %s351_s30, [#allocation3], %s1518_s27, %s1518_s27, %s1519_s14  }
  0x1b   : > { %1325 = dma.hbm_to_vmem [thread:$0]  (!%p1320_p12), %s372_s17, 6144, %s374_s21, [#allocation6], %s1521_s22, %s1521_s22, %s1522_s1  }
  0x1d   : > { %1490 = dma.done.wait (%p1330_p9), [#allocation3], 6144  }
  0x1e   : > { %1492 = vsyncadd (%p1330_p9), [#allocation3], 4294961152 }
  0x1f   : > { %1494 = dma.done.wait (%p1330_p9), [#allocation6], 6144  }
  0x20   : > { %1496 = vsyncadd (%p1330_p9), [#allocation6], 4294961152  ;;  %s1280_s27 = sshll.u32 %s1616_s29, 1  ;;  %v523_v0 = vld [vmem:[#allocation2 + $0xf0] sm:$0xff]  ;;  %v521_v2 = vld [vmem:[#allocation2 + $0xe0] sm:$0xff]  ;;  %vm480_vm0 = vcmask 1040384  }
  0x21   : > { %p470_p13 = scmp.lt.s32.totalorder %s1280_s27, 3  ;;  %v506_v1 = vld [vmem:[#allocation2 + $0x70] sm:$0xff]  ;;  %538 = vmatpush.msra.mxu0 %v523_v0  ;;  %v504_v3 = vld [vmem:[#allocation2 + $0x60] sm:$0xff]  ;;  %vm525_vm1 = vcmask 523264   ;;  %vm486_vm2 = vcmask 1046528   ;;  %v1707_v34 = vld [vmem:[%s1957_s11 + $0x78] sm:$0xff] }
  0x22   : > { %589 = vmatpush.msra.mxu2 %v506_v1  ;;  %v519_v4 = vld [vmem:[#allocation2 + $0xd0] sm:$0xff]  ;;  %v517_v6 = vld [vmem:[#allocation2 + $0xc0] sm:$0xff]  ;;  %v1719_v36 = vld [vmem:[%s1957_s11 + $0x68] sm:$0xff]  ;;  %vm785_vm3 = vcmask 1043456   ;;  %vm781_vm7 = vcmask 31744   ;;  %s1308_s17 = sshll.u32 %s1616_s29, 4 }
  0x23   : > { %s1980_s27 = smov (!%p470_p13, %s1280_s27), 3  ;;  %v502_v5 = vld [vmem:[#allocation2 + $0x50] sm:$0xff]  ;;  %539 = vmatpush.msra.mxu0 %v521_v2  ;;  %v500_v7 = vld [vmem:[#allocation2 + $0x40] sm:$0xff]  ;;  %v1731_v38 = vld [vmem:[%s1957_s11 + $0x58] sm:$0xff]  ;;  %s1183_s30 = scalar_lea.hbm %s1959_s13, %s1308_s17 }
  0x24   : > { %s1281_s1 = sshll.u32 %s1980_s27, 3  ;;  %590 = vmatpush.msra.mxu2 %v504_v3  ;;  %v515_v9 = vld [vmem:[#allocation2 + $0xb0] sm:$0xff]  ;;  %v513_v11 = vld [vmem:[#allocation2 + $0xa0] sm:$0xff]  ;;  %v1743_v40 = vld [vmem:[%s1957_s11 + $0x48] sm:$0xff]  ;;  %s1186_s21 = sshll.u32 %s1183_s30, 4  ;;  %s1187_s21 = int_to_ptr.hbm [resolvable:$true] %s1186_s21 }
  0x25   : > { %s473_s19 = scalar_lea.vmem %s1946_s0, %s1281_s1  ;;  %540 = vmatpush.msra.mxu0 %v519_v4  ;;  %v498_v10 = vld [vmem:[#allocation2 + $0x30] sm:$0xff]  ;;  %v496_v12 = vld [vmem:[#allocation2 + $0x20] sm:$0xff]  ;;  %v1755_v42 = vld [vmem:[%s1957_s11 + $0x38] sm:$0xff]  ;;  %s466_s1 = sand.u32 1, %s1507_s26  }
  0x26   : > { %591 = vmatpush.msra.mxu2 %v502_v5  ;;  %v1672_v8 = vld [vmem:[%s473_s19] sm:$0xff]  ;;  %v511_v14 = vld [vmem:[#allocation2 + $0x90] sm:$0xff]  ;;  %v1678_v20 = vld [vmem:[%s473_s19 + $0x8] sm:$0xff]  ;;  %s1279_s14 = sshll.u32 %s466_s1, 4  ;;  %s1172_s29 = scalar_lea.sflag [#allocation4], %s466_s1 }
  0x27   : > { %541 = vmatpush.msra.mxu0 %v517_v6  ;;  %v481_v13 = vrot.slane %v1672_v8, 7  ;;  %v494_v15 = vld [vmem:[#allocation2 + $0x10] sm:$0xff]  ;;  %v509_v16 = vld [vmem:[#allocation2 + $0x80] sm:$0xff]  ;;  %v482_v22 = vrot.slane %v1678_v20, 7  ;;  %v487_v28 = vrot.slane %v1672_v8, 1  ;;  %v488_v29 = vrot.slane %v1678_v20, 1  ;;  %vm1296_vm8 = vmneg %vm480_vm0 }
  0x28   : > { %592 = vmatpush.msra.mxu2 %v500_v7  ;;  %v492_v17 = vld [vmem:[#allocation2] sm:$0xff]  ;;  %v642_v19 = vld [vmem:[#allocation2 + $0x170] sm:$0xff]  ;;  %v1767_v45 = vld [vmem:[%s1957_s11 + $0x28] sm:$0xff]  ;;  %s468_s15 = scalar_lea.vmem [#allocation7], %s1279_s14  ;;  %s1459_s22 = sshra.s32 %s1187_s21, 4  ;;  %s1460_s22 = int_to_ptr.hbm [resolvable:$true] %s1459_s22 }
  0x29   : > { %542 = vmatpush.msra.mxu0 %v515_v9  ;;  %v1676_v18 = vsel %vm480_vm0, 0.0, %v481_v13  ;;  %v640_v21 = vld [vmem:[#allocation2 + $0x160] sm:$0xff]  ;;  %v638_v23 = vld [vmem:[#allocation2 + $0x150] sm:$0xff]  ;;  %v1686_v25 = vsel %vm480_vm0, %v481_v13, %v482_v22  ;;  %v1695_v32 = vsel %vm486_vm2, %v487_v28, %v488_v29  ;;  %v1700_v33 = vsel %vm486_vm2, %v488_v29, 0.0  ;;  %v1778_v47 = vld [vmem:[%s1957_s11 + $0x18] sm:$0xff]  ;;  %s1184_s16 = sshll.u32 %s468_s15, 4  ;;  %p1466_p3 = scmp.lt.s32.totalorder %s1460_s22, %s1959_s13  ;;  %s1185_s16 = int_to_ptr.vmem [resolvable:$true] %s1184_s16 }
  0x2a   : > { %593 = vmatpush.msra.mxu2 %v498_v10  ;;  %v636_v24 = vld [vmem:[#allocation2 + $0x140] sm:$0xff]  ;;  %v634_v26 = vld [vmem:[#allocation2 + $0x130] sm:$0xff]  ;;  %v1790_v50 = vld [vmem:[%s1957_s11 + $0x8] sm:$0xff]  ;;  %s1461_s27 = scalar_lea.hbm %s1460_s22, 16  ;;  %s1465_s19 = scalar_lea.hbm %s1959_s13, 32 }
  0x2b   : > { %543 = vmatpush.msra.mxu0 %v513_v11  ;;  %v632_v27 = vld [vmem:[#allocation2 + $0x120] sm:$0xff]  ;;  %v630_v30 = vld [vmem:[#allocation2 + $0x110] sm:$0xff]  ;;  %v524_v53 = vld [vmem:[#allocation2 + $0xf8] sm:$0xff]  ;;  %p1462_p0 = scmp.ne.s32.totalorder %s1460_s22, %s1461_s27  ;;  %p1467_p4 = scmp.lt.s32.totalorder %s1465_s19, %s1461_s27 }
  0x2c   : > { %594 = vmatpush.msra.mxu2 %v496_v12  ;;  %v628_v31 = vld [vmem:[#allocation2 + $0x100] sm:$0xff]  ;;  %v1713_v35 = vld [vmem:[%s1957_s11 + $0x70] sm:$0xff]  ;;  %v522_v54 = vld [vmem:[#allocation2 + $0xe8] sm:$0xff]  ;;  %561 = vmatpush.msra.mxu1 %v524_v53 }
  0x2d   : > { %544 = vmatpush.msra.mxu0 %v511_v14  ;;  %v1725_v37 = vld [vmem:[%s1957_s11 + $0x60] sm:$0xff]  ;;  %v1737_v39 = vld [vmem:[%s1957_s11 + $0x50] sm:$0xff]  ;;  %v507_v55 = vld [vmem:[#allocation2 + $0x78] sm:$0xff]  ;;  %p1463_p1 = pnand %p1462_p0, %p1633_p5  ;;  %p1468_p7 = por %p1467_p4, %p1466_p3 }
  0x2e   : > { %595 = vmatpush.msra.mxu2 %v494_v15  ;;  %v1749_v41 = vld [vmem:[%s1957_s11 + $0x40] sm:$0xff]  ;;  %v1761_v44 = vld [vmem:[%s1957_s11 + $0x30] sm:$0xff]  ;;  %v520_v57 = vld [vmem:[#allocation2 + $0xd8] sm:$0xff]  ;;  %612 = vmatpush.msra.mxu3 %v507_v55 }
  0x2f   : > { %545 = vmatpush.msra.mxu0 %v509_v16  ;;  %v1772_v46 = vld [vmem:[%s1957_s11 + $0x20] sm:$0xff]  ;;  %v1784_v48 = vld [vmem:[%s1957_s11 + $0x10] sm:$0xff]  ;;  %562 = vmatpush.msra.mxu1 %v522_v54  ;;  %v518_v59 = vld [vmem:[#allocation2 + $0xc8] sm:$0xff]  ;;  %p1464_p2 = pneg %p1463_p1 }
  0x30   : > { %596 = vmatpush.msra.mxu2 %v492_v17  ;;  %1282 = vmatmul.msk.f32.vlgmr.msra.gmra.mxu0 %vm525_vm1, %v1672_v8  ;;  %v1796_v52 = vld [vmem:[%s1957_s11] sm:$0xff]  ;;  %v516_v62 = vld [vmem:[#allocation2 + $0xb8] sm:$0xff]  ;;  %v505_v28 = vld [vmem:[#allocation2 + $0x68] sm:$0xff] }
  0x31   : > { %1286 = vmatmul.msk.f32.vlgmr.msra.gmra.mxu2 %vm525_vm1, %v1676_v18  ;;  %657 = vmatpush.msrb.mxu0 %v642_v19  ;;  %v1805_v58 = vld [vmem:[%s1948_s2] sm:$0x3]  ;;  %v512_v29 = vld [vmem:[#allocation2 + $0x98] sm:$0xff]  ;;  %v497_v53 = vld [vmem:[#allocation2 + $0x28] sm:$0xff]  ;;  %p1469_p8 = pnand %p1468_p7, %p1464_p2 }
  0x32   : > { %742 = vmatpush.msrb.mxu2 %v1707_v34  ;;  %563 = vmatpush.msra.mxu1 %v520_v57  ;;  %v701_v0 = vperm.slane %v1805_v58, 0  ;;  %v641_v54 = vld [vmem:[#allocation2 + $0x168] sm:$0xff]  ;;  %v495_v55 = vld [vmem:[#allocation2 + $0x18] sm:$0xff] }
  0x33   : > { %658 = vmatpush.msrb.mxu0 %v640_v21  ;;  %613 = vmatpush.msra.mxu3 %v505_v28  ;;  %v493_v57 = vld [vmem:[#allocation2 + $0x8] sm:$0xff]  ;;  %v871_v28 = vld [vmem:[#allocation5 + $0xd0] sm:$0xff] }
  0x34   : > { %743 = vmatpush.msrb.mxu2 %v1713_v35  ;;  %564 = vmatpush.msra.mxu1 %v518_v59  ;;  %v637_v59 = vld [vmem:[#allocation2 + $0x148] sm:$0xff] }
  0x35   : > { %659 = vmatpush.msrb.mxu0 %v638_v23 }
  0x36   : > { %744 = vmatpush.msrb.mxu2 %v1719_v36  ;;  %565 = vmatpush.msra.mxu1 %v516_v62  ;;  %v629_v62 = vld [vmem:[#allocation2 + $0x108] sm:$0xff] }
  0x37   : > { %660 = vmatpush.msrb.mxu0 %v636_v24 }
  0x38   : > { %1283 = vmatmul.msk.f32.gmra.mxu0 %vm525_vm1, %v1678_v20  ;;  %745 = vmatpush.msrb.mxu2 %v1725_v37 }
  0x39   : > { %1287 = vmatmul.msk.f32.gmra.mxu2 %vm525_vm1, %v1686_v25  ;;  %661 = vmatpush.msrb.mxu0 %v634_v26 }
  0x3a   : > { %746 = vmatpush.msrb.mxu2 %v1731_v38 }
  0x3b   : > { %662 = vmatpush.msrb.mxu0 %v632_v27  ;;  %v514_v27 = vld [vmem:[#allocation2 + $0xa8] sm:$0xff] }
  0x3c   : > { %747 = vmatpush.msrb.mxu2 %v1737_v39  ;;  %566 = vmatpush.msra.mxu1 %v514_v27  ;;  %v936_v27 = vld [vmem:[#allocation5 + $0x160] sm:$0xff] }
  0x3d   : > { %663 = vmatpush.msrb.mxu0 %v630_v30  ;;  %v503_v30 = vld [vmem:[#allocation2 + $0x58] sm:$0xff] }
  0x3e   : > { %748 = vmatpush.msrb.mxu2 %v1743_v40  ;;  %567 = vmatpush.msra.mxu1 %v512_v29  ;;  %v855_v29 = vld [vmem:[#allocation5 + $0x58] sm:$0xff] }
  0x3f   : > { %664 = vmatpush.msrb.mxu0 %v628_v31  ;;  %614 = vmatpush.msra.mxu3 %v503_v30  ;;  %v510_v31 = vld [vmem:[#allocation2 + $0x88] sm:$0xff]  ;;  %v935_v30 = vld [vmem:[#allocation5 + $0x158] sm:$0xff] }
  0x40   : > { %1290 = vmatmul.msk.f32.vlgmr.msrb.gmra.mxu0 %vm525_vm1, %v1695_v32  ;;  %749 = vmatpush.msrb.mxu2 %v1749_v41 }
  0x41   : > { %568 = vmatpush.msra.mxu1 %v510_v31  ;;  %v870_v31 = vld [vmem:[#allocation5 + $0xc8] sm:$0xff] }
  0x42   : > { %750 = vmatpush.msrb.mxu2 %v1755_v42  ;;  %1284 = vmatmul.msk.f32.vlgmr.msra.gmra.mxu1 %vm525_vm1, %v1672_v8  ;;  %v635_v8 = vld [vmem:[#allocation2 + $0x138] sm:$0xff] }
  0x44   : > { %751 = vmatpush.msrb.mxu2 %v1761_v44 }
  0x46   : > { %752 = vmatpush.msrb.mxu2 %v1767_v45 }
  0x48   : > { %1291 = vmatmul.msk.f32.gmra.mxu0 %vm525_vm1, %v1700_v33  ;;  %753 = vmatpush.msrb.mxu2 %v1772_v46 }
  0x4a   : > { %754 = vmatpush.msrb.mxu2 %v1778_v47  ;;  %1285 = vmatmul.msk.f32.gmra.mxu1 %vm525_vm1, %v1678_v20 }
  0x4c   : > { %755 = vmatpush.msrb.mxu2 %v1784_v48 }
  0x4e   : > { %756 = vmatpush.msrb.mxu2 %v1790_v50 }
  0x50   : > { %757 = vmatpush.msrb.mxu2 %v1796_v52 }
  0x52   : > { %988 = vmatpush.msra.mxu2 %v1707_v34 }
  0x54   : > { %989 = vmatpush.msra.mxu2 %v1713_v35 }
  0x56   : > { %990 = vmatpush.msra.mxu2 %v1719_v36 }
  0x58   : > { %991 = vmatpush.msra.mxu2 %v1725_v37 }
  0x5a   : > { %992 = vmatpush.msra.mxu2 %v1731_v38 }
  0x5c   : > { %993 = vmatpush.msra.mxu2 %v1737_v39 }
  0x5e   : > { %994 = vmatpush.msra.mxu2 %v1743_v40 }
  0x60   : > { %995 = vmatpush.msra.mxu2 %v1749_v41 }
  0x62   : > { %996 = vmatpush.msra.mxu2 %v1755_v42 }
  0x64   : > { %997 = vmatpush.msra.mxu2 %v1761_v44 }
  0x66   : > { %998 = vmatpush.msra.mxu2 %v1767_v45 }
  0x68   : > { %999 = vmatpush.msra.mxu2 %v1772_v46 }
  0x6a   : > { %1000 = vmatpush.msra.mxu2 %v1778_v47 }
  0x6c   : > { %1001 = vmatpush.msra.mxu2 %v1784_v48 }
  0x6e   : > { %1002 = vmatpush.msra.mxu2 %v1790_v50 }
  0x70   : > { %1003 = vmatpush.msra.mxu2 %v1796_v52 }
  0xad   : > { %v547_v43 = vpop.f32.mrf.mxu0 }
  0xb4   : > { %v598_v51 = vpop.f32.mrf.mxu2 }
  0xb5   : > { %v550_v49 = vpop.f32.mrf.mxu0  ;;  %v599_v60 = vadd.f32 %v598_v51, %v547_v43  ;;  %v501_v43 = vld [vmem:[#allocation2 + $0x48] sm:$0xff]  ;;  %v643_v51 = vld [vmem:[#allocation2 + $0x178] sm:$0xff] }
  0xb6   : > { %615 = vmatpush.msra.mxu3 %v501_v43  ;;  %680 = vmatpush.msrb.mxu1 %v643_v51  ;;  %v854_v43 = vld [vmem:[#allocation5 + $0x50] sm:$0xff]  ;;  %v869_v51 = vld [vmem:[#allocation5 + $0xc0] sm:$0xff] }
  0xb8   : > { %681 = vmatpush.msrb.mxu1 %v641_v54  ;;  %v933_v54 = vld [vmem:[#allocation5 + $0x148] sm:$0xff] }
  0xbc   : > { %v601_v61 = vpop.f32.mrf.mxu2 }
  0xbd   : > { %v666_v56 = vpop.f32.mrf.mxu0  ;;  %v602_v1 = vadd.f32 %v601_v61, %v550_v49  ;;  %v499_v49 = vld [vmem:[#allocation2 + $0x38] sm:$0xff] }
  0xbe   : > { %v695_v63 = vadd.f32 %v666_v56, %v599_v60  ;;  %616 = vmatpush.msra.mxu3 %v499_v49  ;;  %v639_v56 = vld [vmem:[#allocation2 + $0x158] sm:$0xff]  ;;  %v633_v60 = vld [vmem:[#allocation2 + $0x128] sm:$0xff]  ;;  %v934_v49 = vld [vmem:[#allocation5 + $0x150] sm:$0xff] }
  0xbf   : > { %682 = vmatpush.msrb.mxu1 %v639_v56  ;;  %v631_v61 = vld [vmem:[#allocation2 + $0x118] sm:$0xff] }
  0xc0   : > { %v1812_v3 = vadd.f32 %v701_v0, %v695_v63  ;;  %617 = vmatpush.msra.mxu3 %v497_v53  ;;  %v1842_v63 = vld [vmem:[%s1958_s12] sm:$0xf]  ;;  %v853_v53 = vld [vmem:[#allocation5 + $0x48] sm:$0xff] }
  0xc1   : > { %683 = vmatpush.msrb.mxu1 %v637_v59 }
  0xc2   : > { %v716_v6 = vmul.f32 %v1812_v3, %v1812_v3  ;;  %618 = vmatpush.msra.mxu3 %v495_v55  ;;  %v570_v55 = vpop.f32.mrf.mxu1 }
  0xc3   : > { %684 = vmatpush.msrb.mxu1 %v635_v8 }
  0xc4   : > { %619 = vmatpush.msra.mxu3 %v493_v57 }
  0xc5   : > { %v669_v2 = vpop.f32.mrf.mxu0  ;;  %1288 = vmatmul.msk.f32.vlgmr.msra.gmra.mxu3 %vm525_vm1, %v1676_v18  ;;  %685 = vmatpush.msrb.mxu1 %v633_v60 }
  0xc6   : > { %v697_v4 = vadd.f32 %v669_v2, %v602_v1  ;;  %1294 = vmatpush.msk.msrb.mxu3 %vm785_vm3, %v1842_v63 }
  0xc7   : > { %686 = vmatpush.msrb.mxu1 %v631_v61 }
  0xc8   : > { %v1815_v5 = vadd.f32 %v701_v0, %v697_v4 }
  0xc9   : > { %687 = vmatpush.msrb.mxu1 %v629_v62 }
  0xca   : > { %v709_v7 = vadd.f32 %v1815_v5, %v1812_v3  ;;  %v717_v9 = vmul.f32 %v1815_v5, %v1815_v5  ;;  %1292 = vmatmul.msk.f32.vlgmr.msrb.gmra.mxu1 %vm525_vm1, %v1695_v32  ;;  %v573_v56 = vpop.f32.mrf.mxu1 }
  0xcc   : > { %v710_v10 = vrot.slane %v709_v7, 4  ;;  %v718_v11 = vadd.f32 %v717_v9, %v716_v6 }
  0xcd   : > { %1289 = vmatmul.msk.f32.gmra.mxu3 %vm525_vm1, %v1686_v25 }
  0xce   : > { %v711_v12 = vadd.f32 %v710_v10, %v709_v7  ;;  %v719_v13 = vrot.slane %v718_v11, 4 }
  0xd0   : > { %v712_v14 = vrot.slane %v711_v12, 2  ;;  %v720_v15 = vadd.f32 %v719_v13, %v718_v11  ;;  %v875_v13 = vld [vmem:[#allocation5 + $0xf0] sm:$0xff] }
  0xd2   : > { %v713_v16 = vadd.f32 %v712_v14, %v711_v12  ;;  %v721_v17 = vrot.slane %v720_v15, 2  ;;  %1293 = vmatmul.msk.f32.gmra.mxu1 %vm525_vm1, %v1700_v33  ;;  %v876_v12 = vld [vmem:[#allocation5 + $0xf8] sm:$0xff] }
  0xd3   : > { %877 = vmatpush.msra.mxu0 %v876_v12  ;;  %v859_v14 = vld [vmem:[#allocation5 + $0x78] sm:$0xff]  ;;  %v928_v12 = vld [vmem:[#allocation5 + $0x120] sm:$0xff] }
  0xd4   : > { %v714_v19 = vrot.slane %v713_v16, 1  ;;  %v722_v21 = vadd.f32 %v721_v17, %v720_v15  ;;  %v939_v15 = vld [vmem:[#allocation5 + $0x178] sm:$0xff]  ;;  %900 = vmatpush.msra.mxu1 %v859_v14  ;;  %v858_v17 = vld [vmem:[#allocation5 + $0x70] sm:$0xff] }
  0xd5   : > { %878 = vmatpush.msra.mxu0 %v875_v13  ;;  %940 = vmatpush.msra.mxu3 %v939_v15  ;;  %v863_v13 = vld [vmem:[#allocation5 + $0x90] sm:$0xff]  ;;  %v847_v14 = vld [vmem:[#allocation5 + $0x18] sm:$0xff] }
  0xd6   : > { %v723_v22 = vrot.slane %v722_v21, 1  ;;  %v715_v23 = vadd.f32 %v714_v19, %v713_v16  ;;  %v874_v16 = vld [vmem:[#allocation5 + $0xe8] sm:$0xff]  ;;  %v938_v19 = vld [vmem:[#allocation5 + $0x170] sm:$0xff]  ;;  %901 = vmatpush.msra.mxu1 %v858_v17  ;;  %v927_v15 = vld [vmem:[#allocation5 + $0x118] sm:$0xff] }
  0xd7   : > { %879 = vmatpush.msra.mxu0 %v874_v16  ;;  %941 = vmatpush.msra.mxu3 %v938_v19  ;;  %v862_v16 = vld [vmem:[#allocation5 + $0x88] sm:$0xff]  ;;  %v846_v17 = vld [vmem:[#allocation5 + $0x10] sm:$0xff] }
  0xd8   : > { %v724_v24 = vadd.f32 %v723_v22, %v722_v21  ;;  %v873_v21 = vld [vmem:[#allocation5 + $0xe0] sm:$0xff]  ;;  %v857_v22 = vld [vmem:[#allocation5 + $0x68] sm:$0xff]  ;;  %v926_v19 = vld [vmem:[#allocation5 + $0x110] sm:$0xff] }
  0xd9   : > { %880 = vmatpush.msra.mxu0 %v873_v21  ;;  %902 = vmatpush.msra.mxu1 %v857_v22  ;;  %v861_v21 = vld [vmem:[#allocation5 + $0x80] sm:$0xff]  ;;  %v845_v22 = vld [vmem:[#allocation5 + $0x8] sm:$0xff] }
  0xda   : > { %v725_v26 = vsel %vm480_vm0, %v715_v23, %v724_v24  ;;  %v937_v23 = vld [vmem:[#allocation5 + $0x168] sm:$0xff]  ;;  %v872_v24 = vld [vmem:[#allocation5 + $0xd8] sm:$0xff] }
  0xdb   : > { %758 = vmatmul.f32.vlgmr.msrb.gmra.mxu2 %v725_v26  ;;  %v856_v26 = vld [vmem:[#allocation5 + $0x60] sm:$0xff]  ;;  %942 = vmatpush.msra.mxu3 %v937_v23  ;;  %v925_v23 = vld [vmem:[#allocation5 + $0x108] sm:$0xff] }
  0xdc   : > { %881 = vmatpush.msra.mxu0 %v872_v24  ;;  %903 = vmatpush.msra.mxu1 %v856_v26  ;;  %v844_v24 = vld [vmem:[#allocation5] sm:$0xff] }
  0xdd   : > { %943 = vmatpush.msra.mxu3 %v936_v27  ;;  %v924_v26 = vld [vmem:[#allocation5 + $0x100] sm:$0xff] }
  0xde   : > { %882 = vmatpush.msra.mxu0 %v871_v28  ;;  %904 = vmatpush.msra.mxu1 %v855_v29  ;;  %v1375_v27 = vld [vmem:[%s1949_s3] ss:$0 sm:$0xff] }
  0xdf   : > { %944 = vmatpush.msra.mxu3 %v935_v30 }
  0xe0   : > { %883 = vmatpush.msra.mxu0 %v870_v31  ;;  %905 = vmatpush.msra.mxu1 %v854_v43 }
  0xe1   : > { %945 = vmatpush.msra.mxu3 %v934_v49 }
  0xe2   : > { %884 = vmatpush.msra.mxu0 %v869_v51  ;;  %906 = vmatpush.msra.mxu1 %v853_v53 }
  0xe3   : > { %946 = vmatpush.msra.mxu3 %v933_v54 }
 0x147   : > { %v689_v8 = vpop.f32.mrf.mxu1 }
 0x148   : > { %v621_v57 = vpop.f32.mrf.mxu3 }
 0x149   : > { %v622_v59 = vadd.f32 %v621_v57, %v570_v55 }
 0x14b   : > { %v1854_v60 = vadd.f32 %v689_v8, %v622_v59 }
 0x150   : > { %v624_v61 = vpop.f32.mrf.mxu3 }
 0x151   : > { %v1856_v62 = vadd.f32 %v624_v61, %v573_v56 }
 0x15e   : > { %v759_v18 = vpop.f32.mrf.mxu2 }
 0x15f   : > { %v762_v20 = vmul.f32 0.001953125, %v759_v18  ;;  %v868_v18 = vld [vmem:[#allocation5 + $0xb8] sm:$0xff] }
 0x160   : > { %885 = vmatpush.msra.mxu0 %v868_v18 }
 0x161   : > { %v763_v0 = vmul.f32 %v762_v20, %v762_v20 }
 0x163   : > { %v765_v1 = vrot.slane %v763_v0, 7  ;;  %v932_v0 = vld [vmem:[#allocation5 + $0x140] sm:$0xff] }
 0x164   : > { %947 = vmatpush.msra.mxu3 %v932_v0 }
 0x165   : > { %v767_v2 = vsub.f32 %v762_v20, %v765_v1  ;;  %v867_v1 = vld [vmem:[#allocation5 + $0xb0] sm:$0xff] }
 0x166   : > { %886 = vmatpush.msra.mxu0 %v867_v1 }
 0x167   : > { %v768_v4 = vadd.f32 1e-05, %v767_v2  ;;  %v851_v2 = vld [vmem:[#allocation5 + $0x38] sm:$0xff] }
 0x169   : > { %1379 = vrsqrt.f32 %v768_v4  ;;  %vm775_vm5 = vweird.f32 %v768_v4 }
 0x16f   : > { %v1380_v6 = vpop.eup %1379 }
 0x170   : > { %v770_v7 = vmul.f32 %v1380_v6, %v768_v4  ;;  %vm776_vm4 = vweird.f32 %v1380_v6  ;;  %v931_v4 = vld [vmem:[#allocation5 + $0x138] sm:$0xff] }
 0x171   : > { %vm777_vm6 = vmor %vm775_vm5, %vm776_vm4  ;;  %948 = vmatpush.msra.mxu3 %v931_v4 }
 0x172   : > { %v771_v9 = vmul.f32 %v1380_v6, %v770_v7  ;;  %v850_v7 = vld [vmem:[#allocation5 + $0x30] sm:$0xff] }
 0x174   : > { %v772_v25 = vmul.f32 0.5, %v771_v9  ;;  %v930_v9 = vld [vmem:[#allocation5 + $0x130] sm:$0xff] }
 0x175   : > { %949 = vmatpush.msra.mxu3 %v930_v9 }
 0x176   : > { %v773_v10 = vsub.f32 1.5, %v772_v25  ;;  %v865_v25 = vld [vmem:[#allocation5 + $0xa0] sm:$0xff] }
 0x178   : > { %v774_v32 = vmul.f32 %v1380_v6, %v773_v10  ;;  %v849_v10 = vld [vmem:[#allocation5 + $0x28] sm:$0xff] }
 0x17a   : > { %v778_v11 = vsel %vm777_vm6, %v1380_v6, %v774_v32  ;;  %v866_v6 = vld [vmem:[#allocation5 + $0xa8] sm:$0xff] }
 0x17b   : > { %v779_v33 = vsel %vm480_vm0, %v762_v20, %v778_v11  ;;  %v852_v20 = vld [vmem:[#allocation5 + $0x40] sm:$0xff]  ;;  %887 = vmatpush.msra.mxu0 %v866_v6  ;;  %v929_v32 = vld [vmem:[#allocation5 + $0x128] sm:$0xff]  ;;  %v864_v11 = vld [vmem:[#allocation5 + $0x98] sm:$0xff] }
 0x17c   : > { %1295 = vmatmul.msk.f32.vlgmr.msrb.gmra.mxu3 %vm781_vm7, %v779_v33  ;;  %907 = vmatpush.msra.mxu1 %v852_v20  ;;  %v848_v33 = vld [vmem:[#allocation5 + $0x20] sm:$0xff] }
 0x17d   : > { %888 = vmatpush.msra.mxu0 %v865_v25  ;;  %950 = vmatpush.msra.mxu3 %v929_v32 }
 0x17e   : > { %908 = vmatpush.msra.mxu1 %v851_v2 }
 0x17f   : > { %889 = vmatpush.msra.mxu0 %v864_v11  ;;  %951 = vmatpush.msra.mxu3 %v928_v12 }
 0x180   : > { %909 = vmatpush.msra.mxu1 %v850_v7 }
 0x181   : > { %890 = vmatpush.msra.mxu0 %v863_v13  ;;  %952 = vmatpush.msra.mxu3 %v927_v15 }
 0x182   : > { %910 = vmatpush.msra.mxu1 %v849_v10 }
 0x183   : > { %891 = vmatpush.msra.mxu0 %v862_v16  ;;  %953 = vmatpush.msra.mxu3 %v926_v19 }
 0x184   : > { %911 = vmatpush.msra.mxu1 %v848_v33 }
 0x185   : > { %892 = vmatpush.msra.mxu0 %v861_v21  ;;  %954 = vmatpush.msra.mxu3 %v925_v23 }
 0x186   : > { %912 = vmatpush.msra.mxu1 %v847_v14 }
 0x187   : > { %1299 = vmatpush.msk.msrb.mxu0 %vm785_vm3, %v1842_v63  ;;  %955 = vmatpush.msra.mxu3 %v924_v26 }
 0x188   : > { %913 = vmatpush.msra.mxu1 %v846_v17 }
 0x189   : > { %1301 = vmatpush.msk.msrb.mxu3 %vm785_vm3, %v1842_v63 }
 0x18a   : > { %914 = vmatpush.msra.mxu1 %v845_v22 }
 0x18c   : > { %915 = vmatpush.msra.mxu1 %v844_v24 }
 0x18e   : > { %1089 = vmatpush.msrb.mxu1 %v1707_v34 }
 0x190   : > { %1090 = vmatpush.msrb.mxu1 %v1713_v35 }
 0x192   : > { %1091 = vmatpush.msrb.mxu1 %v1719_v36  ;;  %v814_v36 = vld [vmem:[%s1950_s4] sm:$0x1] }
 0x194   : > { %1092 = vmatpush.msrb.mxu1 %v1725_v37 }
 0x196   : > { %1093 = vmatpush.msrb.mxu1 %v1731_v38 }
 0x198   : > { %1094 = vmatpush.msrb.mxu1 %v1737_v39 }
 0x19a   : > { %1095 = vmatpush.msrb.mxu1 %v1743_v40 }
 0x19c   : > { %1096 = vmatpush.msrb.mxu1 %v1749_v41 }
 0x19e   : > { %1097 = vmatpush.msrb.mxu1 %v1755_v42 }
 0x1a0   : > { %1098 = vmatpush.msrb.mxu1 %v1761_v44 }
 0x1a2   : > { %1099 = vmatpush.msrb.mxu1 %v1767_v45 }
 0x1a4   : > { %1100 = vmatpush.msrb.mxu1 %v1772_v46 }
 0x1a6   : > { %1101 = vmatpush.msrb.mxu1 %v1778_v47 }
 0x1a8   : > { %1102 = vmatpush.msrb.mxu1 %v1784_v48 }
 0x1aa   : > { %1103 = vmatpush.msrb.mxu1 %v1790_v50  ;;  %v692_v50 = vpop.f32.mrf.mxu1 }
 0x1ac   : > { %1104 = vmatpush.msrb.mxu1 %v1796_v52  ;;  %v1376_v52 = vld [vmem:[%s1952_s6] ss:$0 sm:$0xff] }
 0x1ff   : > { %v806_v34 = vpop.f32.mrf.mxu3 }
 0x200   : > { %v813_v63 = vmul.f32 %v1375_v27, %v806_v34 }
 0x202   : > { %v816_v35 = vrot.slane %v813_v63, 1  ;;  %v820_v38 = vperm.slane %v813_v63, 1 }
 0x204   : > { %v818_v37 = vmul.f32 %v816_v35, %v806_v34  ;;  %v821_v40 = vmul.f32 %v820_v38, %v1812_v3  ;;  %v822_v41 = vmul.f32 %v820_v38, %v1815_v5 }
 0x206   : > { %v819_v39 = vsub.f32 %v814_v36, %v818_v37  ;;  %v1377_v37 = vld [vmem:[%s1953_s7] ss:$0 sm:$0xff] }
 0x208   : > { %v824_v28 = vperm.slane %v819_v39, 0 }
 0x20a   : > { %v826_v42 = vadd.f32 %v824_v28, %v821_v40  ;;  %v827_v44 = vadd.f32 %v824_v28, %v822_v41  ;;  %v1054_v41 = vld [vmem:[%s1954_s8] sm:$0x1] }
 0x20c   : > { %v828_v29 = vmax.f32 %v826_v42, 0.0  ;;  %v829_v30 = vmax.f32 %v827_v44, 0.0 }
 0x20e   : > { %v832_v45 = vrot.slane %v828_v29, 7  ;;  %893 = vmatmul.f32.vlgmr.msra.gmra.mxu0 %v828_v29  ;;  %v838_v46 = vrot.slane %v828_v29, 1  ;;  %v839_v31 = vrot.slane %v829_v30, 1  ;;  %v833_v47 = vrot.slane %v829_v30, 7 }
 0x20f   : > { %v702_v29 = vperm.slane %v1805_v58, 1 }
 0x210   : > { %1297 = vmatmul.msk.f32.vlgmr.msra.gmra.mxu1 %vm1296_vm8, %v832_v45  ;;  %v840_v3 = vsel %vm486_vm2, %v838_v46, %v839_v31  ;;  %v834_v48 = vsel %vm480_vm0, %v832_v45, %v833_v47 }
 0x211   : > { %956 = vmatmul.f32.vlgmr.msra.gmra.mxu3 %v840_v3 }
 0x216   : > { %896 = vmatmul.f32.gmra.mxu0 %v829_v30  ;;  %v698_v30 = vadd.f32 %v692_v50, %v1856_v62 }
 0x218   : > { %919 = vmatmul.f32.gmra.mxu1 %v834_v48  ;;  %v706_v48 = vadd.f32 %v702_v29, %v1854_v60 }
 0x219   : > { %1298 = vmatmul.msk.f32.gmra.mxu3 %vm486_vm2, %v839_v31 }
 0x28b   : > { %v894_v43 = vpop.f32.mrf.mxu0 }
 0x28d   : > { %v917_v5 = vpop.f32.mrf.mxu1 }
 0x28e   : > { %v918_v51 = vadd.f32 %v917_v5, %v894_v43  ;;  %v708_v5 = vadd.f32 %v702_v29, %v698_v30 }
 0x293   : > { %v897_v55 = vpop.f32.mrf.mxu0 }
 0x294   : > { %v957_v49 = vpop.f32.mrf.mxu3 }
 0x295   : > { %v920_v53 = vpop.f32.mrf.mxu1  ;;  %v963_v54 = vadd.f32 %v957_v49, %v918_v51 }
 0x296   : > { %v921_v56 = vadd.f32 %v920_v53, %v897_v55 }
 0x297   : > { %v969_v59 = vadd.f32 %v1376_v52, %v963_v54 }
 0x299   : > { %v978_v18 = vmul.f32 %v969_v59, %v969_v59 }
 0x29c   : > { %v960_v57 = vpop.f32.mrf.mxu3 }
 0x29d   : > { %v964_v8 = vadd.f32 %v960_v57, %v921_v56 }
 0x29f   : > { %v970_v61 = vadd.f32 %v1376_v52, %v964_v8 }
 0x2a1   : > { %v971_v20 = vadd.f32 %v970_v61, %v969_v59  ;;  %v979_v0 = vmul.f32 %v970_v61, %v970_v61 }
 0x2a3   : > { %v972_v1 = vrot.slane %v971_v20, 4  ;;  %v980_v2 = vadd.f32 %v979_v0, %v978_v18 }
 0x2a5   : > { %v973_v4 = vadd.f32 %v972_v1, %v971_v20  ;;  %v981_v6 = vrot.slane %v980_v2, 4 }
 0x2a7   : > { %v974_v7 = vrot.slane %v973_v4, 2  ;;  %v982_v9 = vadd.f32 %v981_v6, %v980_v2 }
 0x2a9   : > { %v975_v25 = vadd.f32 %v974_v7, %v973_v4  ;;  %v983_v10 = vrot.slane %v982_v9, 2 }
 0x2ab   : > { %v976_v32 = vrot.slane %v975_v25, 1  ;;  %v984_v11 = vadd.f32 %v983_v10, %v982_v9 }
 0x2ad   : > { %v985_v33 = vrot.slane %v984_v11, 1  ;;  %v977_v12 = vadd.f32 %v976_v32, %v975_v25 }
 0x2af   : > { %v986_v13 = vadd.f32 %v985_v33, %v984_v11 }
 0x2b1   : > { %v987_v14 = vsel %vm480_vm0, %v977_v12, %v986_v13 }
 0x2b2   : > { %1004 = vmatmul.f32.vlgmr.msra.gmra.mxu2 %v987_v14 }
 0x335   : > { %v1005_v15 = vpop.f32.mrf.mxu2 }
 0x336   : > { %v1008_v16 = vmul.f32 0.001953125, %v1005_v15 }
 0x338   : > { %v1009_v17 = vmul.f32 %v1008_v16, %v1008_v16 }
 0x33a   : > { %v1011_v19 = vrot.slane %v1009_v17, 7  ;;  %v1378_v17 = vld [vmem:[%s1955_s9] ss:$0 sm:$0xff] }
 0x33c   : > { %v1013_v21 = vsub.f32 %v1008_v16, %v1011_v19 }
 0x33e   : > { %v1014_v22 = vadd.f32 1e-05, %v1013_v21 }
 0x340   : > { %1381 = vrsqrt.f32 %v1014_v22  ;;  %vm1021_vm10 = vweird.f32 %v1014_v22 }
 0x346   : > { %v1382_v23 = vpop.eup %1381 }
 0x347   : > { %v1016_v24 = vmul.f32 %v1382_v23, %v1014_v22  ;;  %vm1022_vm9 = vweird.f32 %v1382_v23 }
 0x348   : > { %vm1023_vm11 = vmor %vm1021_vm10, %vm1022_vm9 }
 0x349   : > { %v1017_v26 = vmul.f32 %v1382_v23, %v1016_v24 }
 0x34b   : > { %v1018_v27 = vmul.f32 0.5, %v1017_v26 }
 0x34d   : > { %v1019_v34 = vsub.f32 1.5, %v1018_v27 }
 0x34f   : > { %v1020_v63 = vmul.f32 %v1382_v23, %v1019_v34 }
 0x351   : > { %v1024_v35 = vsel %vm1023_vm11, %v1382_v23, %v1020_v63  ;;  %v1155_v23 = vld [vmem:[%s1956_s10] sm:$0x1] }
 0x352   : > { %v1025_v36 = vsel %vm480_vm0, %v1008_v16, %v1024_v35 }
 0x353   : > { %1300 = vmatmul.msk.f32.vlgmr.msrb.gmra.mxu0 %vm781_vm7, %v1025_v36 }
 0x3d0   : > { %v1046_v38 = vpop.f32.mrf.mxu0 }
 0x3d1   : > { %v1053_v39 = vmul.f32 %v1377_v37, %v1046_v38 }
 0x3d3   : > { %v1056_v40 = vrot.slane %v1053_v39, 1  ;;  %v1060_v42 = vperm.slane %v1053_v39, 1 }
 0x3d5   : > { %v1058_v28 = vmul.f32 %v1056_v40, %v1046_v38  ;;  %v1061_v45 = vmul.f32 %v1060_v42, %v969_v59  ;;  %v1062_v46 = vmul.f32 %v1060_v42, %v970_v61 }
 0x3d7   : > { %v1059_v44 = vsub.f32 %v1054_v41, %v1058_v28 }
 0x3d9   : > { %v1064_v31 = vperm.slane %v1059_v44, 0 }
 0x3db   : > { %v1066_v3 = vadd.f32 %v1064_v31, %v1061_v45  ;;  %v1067_v47 = vadd.f32 %v1064_v31, %v1062_v46 }
 0x3dd   : > { %v1068_v43 = vmax.f32 %v1066_v3, 0.0  ;;  %v1069_v49 = vmax.f32 %v1067_v47, 0.0 }
 0x3df   : > { %v1070_v51 = vadd.f32 %v1068_v43, %v706_v48  ;;  %v1071_v53 = vadd.f32 %v1069_v49, %v708_v5 }
 0x3e1   : > { %v1072_v54 = vadd.f32 %v1071_v53, %v1070_v51  ;;  %v1079_v52 = vmul.f32 %v1070_v51, %v1070_v51  ;;  %v1080_v55 = vmul.f32 %v1071_v53, %v1071_v53 }
 0x3e3   : > { %v1073_v56 = vrot.slane %v1072_v54, 4  ;;  %v1081_v57 = vadd.f32 %v1080_v55, %v1079_v52 }
 0x3e5   : > { %v1074_v58 = vadd.f32 %v1073_v56, %v1072_v54  ;;  %v1082_v8 = vrot.slane %v1081_v57, 4 }
 0x3e7   : > { %v1075_v62 = vrot.slane %v1074_v58, 2  ;;  %v1083_v50 = vadd.f32 %v1082_v8, %v1081_v57 }
 0x3e9   : > { %v1076_v59 = vadd.f32 %v1075_v62, %v1074_v58  ;;  %v1084_v61 = vrot.slane %v1083_v50, 2 }
 0x3eb   : > { %v1077_v18 = vrot.slane %v1076_v59, 1  ;;  %v1085_v20 = vadd.f32 %v1084_v61, %v1083_v50 }
 0x3ed   : > { %v1086_v0 = vrot.slane %v1085_v20, 1  ;;  %v1078_v60 = vadd.f32 %v1077_v18, %v1076_v59 }
 0x3ef   : > { %v1087_v1 = vadd.f32 %v1086_v0, %v1085_v20 }
 0x3f1   : > { %v1088_v2 = vsel %vm480_vm0, %v1078_v60, %v1087_v1 }
 0x3f2   : > { %1105 = vmatmul.f32.vlgmr.msrb.gmra.mxu1 %v1088_v2 }
 0x46f   : > { %v1106_v4 = vpop.f32.mrf.mxu1 }
 0x470   : > { %v1109_v6 = vmul.f32 0.001953125, %v1106_v4 }
 0x472   : > { %v1110_v7 = vmul.f32 %v1109_v6, %v1109_v6 }
 0x474   : > { %v1112_v9 = vrot.slane %v1110_v7, 7 }
 0x476   : > { %v1114_v25 = vsub.f32 %v1109_v6, %v1112_v9 }
 0x478   : > { %v1115_v10 = vadd.f32 1e-05, %v1114_v25 }
 0x47a   : > { %1383 = vrsqrt.f32 %v1115_v10  ;;  %vm1122_vm13 = vweird.f32 %v1115_v10 }
 0x480   : > { %v1384_v32 = vpop.eup %1383 }
 0x481   : > { %v1117_v11 = vmul.f32 %v1384_v32, %v1115_v10  ;;  %vm1123_vm12 = vweird.f32 %v1384_v32 }
 0x482   : > { %vm1124_vm14 = vmor %vm1122_vm13, %vm1123_vm12 }
 0x483   : > { %v1118_v33 = vmul.f32 %v1384_v32, %v1117_v11 }
 0x485   : > { %v1119_v12 = vmul.f32 0.5, %v1118_v33 }
 0x487   : > { %v1120_v13 = vsub.f32 1.5, %v1119_v12 }
 0x489   : > { %v1121_v14 = vmul.f32 %v1384_v32, %v1120_v13 }
 0x48b   : > { %v1125_v15 = vsel %vm1124_vm14, %v1384_v32, %v1121_v14 }
 0x48c   : > { %v1126_v16 = vsel %vm480_vm0, %v1109_v6, %v1125_v15 }
 0x48d   : > { %1302 = vmatmul.msk.f32.vlgmr.msrb.gmra.mxu3 %vm781_vm7, %v1126_v16 }
 0x510   : > { %v1147_v19 = vpop.f32.mrf.mxu3 }
 0x511   : > { %v1154_v21 = vmul.f32 %v1378_v17, %v1147_v19 }
 0x513   : > { %v1157_v22 = vrot.slane %v1154_v21, 1  ;;  %v1161_v26 = vperm.slane %v1154_v21, 1 }
 0x515   : > { %v1159_v24 = vmul.f32 %v1157_v22, %v1147_v19  ;;  %v1162_v34 = vmul.f32 %v1161_v26, %v1070_v51  ;;  %v1163_v63 = vmul.f32 %v1161_v26, %v1071_v53 }
 0x517   : > { %v1160_v27 = vsub.f32 %v1155_v23, %v1159_v24 }
 0x519   : > { %v1165_v35 = vperm.slane %v1160_v27, 0 }
 0x51b   : > { %v1167_v36 = vadd.f32 %v1165_v35, %v1162_v34  ;;  %v1168_v37 = vadd.f32 %v1165_v35, %v1163_v63 }
 0x51d   : > { %1169 = vst [vmem:[%s468_s15] sm:$0xff] %v1167_v36 }
 0x51e   : > { %1170 = vst [vmem:[%s468_s15 + $0x8] sm:$0xff] %v1168_v37 }
 0x51f   : > { %1472 = shalt.err (!%p1469_p8)
}
 0x520   : > { %s1523_s1 = smov 128   ;;  %s1524_s24 = smov 8  }
 0x521   : > { %1317 = dma.vmem_to_hbm [thread:$0]  (%p1633_p5), %s1185_s16, 256, %s1187_s21, %s1172_s29, %s1523_s1, %s1523_s1, %s1524_s24  }
 0x522 PF: > { %p1334_p9 = scmp.ge.s32.totalorder %s1515_s28, 2  ;;  %s1201_s15 = sand.u32 1, %s1503_s25  }
 0x523   : > { %s1202_s14 = scalar_lea.sflag [#allocation4], %s1201_s15 }
 0x524   : > { %p1327_p10 = pnand %p1334_p9, %p1637_p6 }
 0x526   : > { %p1328_p11 = pneg %p1327_p10 }
 0x528   : > { %1498 = dma.done.wait (%p1328_p11), %s1202_s14, 256  }
 0x529   : > { %1500 = vsyncadd (%p1328_p11), %s1202_s14, 4294967040  ;;  %s1974_s28 = sld [smem:[#allocation12_spill]]  ;;  %s1977_s25 = smov %s1507_s26 }
 0x52a   : > { %s1975_s22 = sld [smem:[#allocation11_spill]] }
 0x52b   : > { %s1976_s27 = sld [smem:[#allocation13_spill]] }
 0x52f   : > { %p25_p12 = scmp.ge.s32.totalorder %s1974_s28, 4  }
 0x530   : > { %s1978_s26 = smov %s1975_s22 }
 0x531   :  { %27 = sbr.rel (!%p25_p12) target bundleno = 7 (0x7), region = 120 }
 0x536   :  { %1208 = vsyncpa [#allocation3], 1 }
 0x537   :  { %1210 = vsyncpa [#allocation3 + $0x1], 1 }
 0x538   :  { %1211 = vsyncpa [#allocation6], 1 }
 0x539   :  { %1212 = vsyncpa [#allocation4], 1 }
 0x53a   :  { %1214 = vsyncpa [#allocation4 + $0x1], 1 }

</bundles_post_ra>
